<compile_context>
chip_gen: v6e
topology: v6e:2x2x1
jax: 0.10.0
libtpu: 0.0.40
codegen_flags: <defaults>
</compile_context>

<pallas_src>
import jax
import jax.numpy as jnp
from jax.experimental import pallas as pl
from jax.experimental.pallas import tpu as pltpu


# ---------------------------------------------------------------------------
# Kernels
# ---------------------------------------------------------------------------
def gcn1_kernel(a_ref, xw1_ref, b1_ref, w2_ref, o_ref, acc_ref):
    """Row tile of H1W2 = relu(A_hat @ XW1 + b1) @ W2, reducing over A cols."""
    k = pl.program_id(1)

    @pl.when(k == 0)
    def _init():
        acc_ref[...] = jnp.zeros_like(acc_ref)

    # N^2 aggregation on the lane-dense 128-wide pre-transformed features.
    acc_ref[...] += jnp.dot(a_ref[...], xw1_ref[...],
                            preferred_element_type=jnp.float32)

    @pl.when(k == pl.num_programs(1) - 1)
    def _finalize():
        h1 = jnp.maximum(acc_ref[...] + b1_ref[...], 0.0)
        # dropout(training=False) -> identity
        o_ref[...] = jnp.dot(h1.astype(jnp.bfloat16), w2_ref[...],
                             preferred_element_type=jnp.float32
                             ).astype(o_ref.dtype)


def gcn2_head_kernel(a_ref, h1w2_ref, b2_ref, wf_ref, bf_ref, o_ref, acc_ref):
    """Row tile of log_softmax((A_hat @ H1W2 + b2) @ Wf + bf)."""
    k = pl.program_id(1)

    @pl.when(k == 0)
    def _init():
        acc_ref[...] = jnp.zeros_like(acc_ref)

    acc_ref[...] += jnp.dot(a_ref[...], h1w2_ref[...],
                            preferred_element_type=jnp.float32)

    @pl.when(k == pl.num_programs(1) - 1)
    def _finalize():
        h2 = acc_ref[...] + b2_ref[...]
        # dropout(training=False) -> identity
        # Padded class columns of bf hold -1e30 so they vanish from the
        # (f32, lane-dense 128-wide) log_softmax.
        logits = jnp.dot(h2.astype(jnp.bfloat16), wf_ref[...],
                         preferred_element_type=jnp.float32) + bf_ref[...]
        m = jnp.max(logits, axis=1, keepdims=True)
        z = logits - m
        lse = jnp.log(jnp.sum(jnp.exp(z), axis=1, keepdims=True))
        o_ref[...] = (z - lse).astype(o_ref.dtype)


def fused_small_kernel(a_ref, xw1_ref, b1_ref, w2_ref, b2_ref, wf_ref, bf_ref,
                       o_ref):
    """Whole forward for a single-block graph: A is loaded into VMEM once."""
    a = a_ref[...]
    h1 = jnp.maximum(
        jnp.dot(a, xw1_ref[...], preferred_element_type=jnp.float32)
        + b1_ref[...], 0.0)
    h1w2 = jnp.dot(h1.astype(jnp.bfloat16), w2_ref[...],
                   preferred_element_type=jnp.float32)
    h2 = jnp.dot(a, h1w2.astype(jnp.bfloat16),
                 preferred_element_type=jnp.float32) + b2_ref[...]
    logits = jnp.dot(h2.astype(jnp.bfloat16), wf_ref[...],
                     preferred_element_type=jnp.float32) + bf_ref[...]
    m = jnp.max(logits, axis=1, keepdims=True)
    z = logits - m
    lse = jnp.log(jnp.sum(jnp.exp(z), axis=1, keepdims=True))
    o_ref[...] = (z - lse).astype(o_ref.dtype)


# ---------------------------------------------------------------------------
# Graph preprocessing (JAX glue)
# ---------------------------------------------------------------------------
def build_normalized_adjacency(edge_index, num_nodes, n_pad=None,
                               dtype=jnp.float32):
    """A_hat = D^{-1/2}(A+I)D^{-1/2}, A_hat[dst, src]; duplicates summed.

    Built directly at the padded size (padded rows/cols have zero degree so
    they stay all-zero); degree-scaling and dtype cast are one fused pass.
    """
    if n_pad is None:
        n_pad = num_nodes
    src = edge_index[0]
    dst = edge_index[1]
    loops = jnp.arange(num_nodes, dtype=edge_index.dtype)
    src = jnp.concatenate([src, loops])
    dst = jnp.concatenate([dst, loops])
    a = jnp.zeros((n_pad, n_pad), jnp.float32).at[dst, src].add(1.0)
    deg = jnp.sum(a, axis=1)
    dinv = jnp.where(deg > 0, jax.lax.rsqrt(deg), 0.0)
    return (dinv[:, None] * a * dinv[None, :]).astype(dtype)


def _round_up(x, m):
    return (x + m - 1) // m * m


def _choose_tiles(n):
    """Returns (tm, tk, n_pad). Small graphs -> single full block."""
    if n <= 512:
        n_pad = _round_up(max(n, 8), 8)
        return n_pad, n_pad, n_pad
    tm = 512                                   # node-row tile ("parallel")
    n_pad = _round_up(n, tm)
    # Reduction-axis tile: biggest of {512,1024,2048} dividing n_pad.
    # tm=512, tk=2048 worst case: 2*(512*2048*2B) A bufs + acc/out ~ 5 MiB,
    # comfortably under the 48 MiB limit (v7x has 64 MiB physical VMEM).
    tk = max(c for c in (512, 1024, 2048) if n_pad % c == 0)
    return tm, tk, n_pad


# ---------------------------------------------------------------------------
# Forward wrapper
# ---------------------------------------------------------------------------
def building_gnn_forward(x, edge_index, params):
    n, _ = x.shape
    d1 = params["w1"].shape[1]          # 128
    d2 = params["w2"].shape[1]          # 256
    num_classes = params["wf"].shape[1]

    tm, tk, n_pad = _choose_tiles(n)

    # bf16 MXU operands, f32 accumulation everywhere.
    a_pad = build_normalized_adjacency(edge_index, n, n_pad=n_pad,
                                       dtype=jnp.bfloat16)

    # Pre-transform features: XW1 is an N x F x 128 matmul (trivially cheap)
    # so the N^2 aggregation runs on a full 128-lane-wide operand.
    xw1 = jnp.pad(x.astype(jnp.float32) @ params["w1"],
                  ((0, n_pad - n), (0, 0))).astype(jnp.bfloat16)

    w2 = params["w2"].astype(jnp.bfloat16)
    b1 = params["b1"].reshape(1, d1).astype(jnp.float32)
    b2 = params["b2"].reshape(1, d2).astype(jnp.float32)

    # Lane-pad the class dim to 128; padded bias columns get -1e30 so they
    # contribute nothing to the (f32) log_softmax.
    c_pad = _round_up(num_classes, 128)
    wf_pad = jnp.pad(params["wf"].astype(jnp.bfloat16),
                     ((0, 0), (0, c_pad - num_classes)))
    bf_pad = jnp.full((1, c_pad), -1e30, jnp.float32)
    bf_pad = bf_pad.at[:, :num_classes].set(
        params["bf"].reshape(1, num_classes).astype(jnp.float32))

    vmem_limit = 48 * 1024 * 1024   # headroom below v7x's 64 MiB physical

    # ---- Small graph: single block, whole forward in one pallas_call -------
    if n_pad == tm:
        out_pad = pl.pallas_call(
            fused_small_kernel,
            out_shape=jax.ShapeDtypeStruct((n_pad, c_pad), jnp.float32),
            grid_spec=pltpu.PrefetchScalarGridSpec(
                num_scalar_prefetch=0,
                grid=(1,),
                in_specs=[
                    pl.BlockSpec((n_pad, n_pad), lambda i: (0, 0)),  # A_hat
                    pl.BlockSpec((n_pad, d1), lambda i: (0, 0)),     # XW1
                    pl.BlockSpec((1, d1), lambda i: (0, 0)),         # b1
                    pl.BlockSpec((d1, d2), lambda i: (0, 0)),        # W2
                    pl.BlockSpec((1, d2), lambda i: (0, 0)),         # b2
                    pl.BlockSpec((d2, c_pad), lambda i: (0, 0)),     # Wf
                    pl.BlockSpec((1, c_pad), lambda i: (0, 0)),      # bf
                ],
                out_specs=pl.BlockSpec((n_pad, c_pad), lambda i: (0, 0)),
            ),
            compiler_params=pltpu.CompilerParams(
                dimension_semantics=("arbitrary",),
                vmem_limit_bytes=vmem_limit),
        )(a_pad, xw1, b1, w2, b2, wf_pad, bf_pad)
        return out_pad[:n, :num_classes]

    # ---- Tiled path: node-row axis parallel, A-column reduction axis last --
    grid = (n_pad // tm, n_pad // tk)
    cparams = pltpu.CompilerParams(
        dimension_semantics=("parallel", "arbitrary"),
        vmem_limit_bytes=vmem_limit)

    # Layer 1 (+ fused W2): H1W2 = relu(A_hat @ XW1 + b1) @ W2   (bf16 out)
    h1w2 = pl.pallas_call(
        gcn1_kernel,
        out_shape=jax.ShapeDtypeStruct((n_pad, d2), jnp.bfloat16),
        grid_spec=pltpu.PrefetchScalarGridSpec(
            num_scalar_prefetch=0,
            grid=grid,
            in_specs=[
                pl.BlockSpec((tm, tk), lambda i, k: (i, k)),   # A tile
                pl.BlockSpec((tk, d1), lambda i, k: (k, 0)),   # XW1 row tile
                pl.BlockSpec((1, d1), lambda i, k: (0, 0)),    # b1
                pl.BlockSpec((d1, d2), lambda i, k: (0, 0)),   # W2 (resident)
            ],
            out_specs=pl.BlockSpec((tm, d2), lambda i, k: (i, 0)),
            scratch_shapes=[pltpu.VMEM((tm, d1), jnp.float32)],
        ),
        compiler_params=cparams,
    )(a_pad, xw1, b1, w2)

    # Layer 2 + Linear head + log_softmax (fused finalize)
    out_pad = pl.pallas_call(
        gcn2_head_kernel,
        out_shape=jax.ShapeDtypeStruct((n_pad, c_pad), jnp.float32),
        grid_spec=pltpu.PrefetchScalarGridSpec(
            num_scalar_prefetch=0,
            grid=grid,
            in_specs=[
                pl.BlockSpec((tm, tk), lambda i, k: (i, k)),    # A tile
                pl.BlockSpec((tk, d2), lambda i, k: (k, 0)),    # H1W2 row tile
                pl.BlockSpec((1, d2), lambda i, k: (0, 0)),     # b2
                pl.BlockSpec((d2, c_pad), lambda i, k: (0, 0)),  # Wf (padded)
                pl.BlockSpec((1, c_pad), lambda i, k: (0, 0)),   # bf (padded)
            ],
            out_specs=pl.BlockSpec((tm, c_pad), lambda i, k: (i, 0)),
            scratch_shapes=[pltpu.VMEM((tm, d2), jnp.float32)],
        ),
        compiler_params=cparams,
    )(a_pad, h1w2, b2, wf_pad, bf_pad)

    return out_pad[:n, :num_classes]


# ---------------------------------------------------------------------------
# Pure-JAX f32 reference (for correctness check)
# ---------------------------------------------------------------------------
def building_gnn_reference(x, edge_index, params):
    n = x.shape[0]
    a = build_normalized_adjacency(edge_index, n)
    h = jnp.maximum(a @ (x @ params["w1"]) + params["b1"], 0.0)
    h = a @ (h @ params["w2"]) + params["b2"]
    logits = h @ params["wf"] + params["bf"]
    return jax.nn.log_softmax(logits, axis=1)


# ---------------------------------------------------------------------------
# Params
# ---------------------------------------------------------------------------
def init_params(key, num_features, num_classes, h1=128, h2=256):
    k1, k2, k3 = jax.random.split(key, 3)

    def glorot(k, shape):
        fan_in, fan_out = shape
        lim = jnp.sqrt(6.0 / (fan_in + fan_out))
        return jax.random.uniform(k, shape, jnp.float32, -lim, lim)

    return {
        "w1": glorot(k1, (num_features, h1)),
        "b1": jnp.zeros((1, h1), jnp.float32),
        "w2": glorot(k2, (h1, h2)),
        "b2": jnp.zeros((1, h2), jnp.float32),
        "wf": glorot(k3, (h2, num_classes)),
        "bf": jnp.zeros((1, num_classes), jnp.float32),
    }


def _check(n_nodes, n_edges, num_features, num_classes, key):
    k_x, k_e, k_p = jax.random.split(key, 3)
    x = jax.random.normal(k_x, (n_nodes, num_features), jnp.float32)
    edge_index = jax.random.randint(k_e, (2, n_edges), 0, n_nodes,
                                    dtype=jnp.int32)
    params = init_params(k_p, num_features, num_classes)

    out = jax.block_until_ready(building_gnn_forward(x, edge_index, params))
    assert out.shape == (n_nodes, num_classes)
    # log_softmax rows must sum (in prob space) to ~1
    assert jnp.allclose(jnp.sum(jnp.exp(out), axis=1), 1.0, atol=1e-4)
    # bf16-MXU kernel vs f32 pure-JAX reference
    ref = building_gnn_reference(x, edge_index, params)
    err = float(jnp.max(jnp.abs(out - ref)))
    assert jnp.allclose(out, ref, atol=2e-1), err


if __name__ == "__main__":
    key = jax.random.PRNGKey(0)
    k_small, k_big = jax.random.split(key)

    # Small graph -> fully fused single-block kernel.
    _check(n_nodes=32, n_edges=64, num_features=16, num_classes=8, key=k_small)
    # Larger graph -> tiled two-kernel path (exercises the reduction grid).
    _check(n_nodes=600, n_edges=2400, num_features=16, num_classes=8,
           key=k_big)

    print("KERNEL_OK")
</pallas_src>

<mosaic_0001>
module attributes {stable_mosaic.version = 11 : i64} {
  func.func @fused_small_kernel(%arg0: i32, %arg1: memref<32x32xbf16, #tpu.memory_space<vmem>>, %arg2: memref<32x128xbf16, #tpu.memory_space<vmem>>, %arg3: memref<1x128xf32, #tpu.memory_space<vmem>>, %arg4: memref<128x256xbf16, #tpu.memory_space<vmem>>, %arg5: memref<1x256xf32, #tpu.memory_space<vmem>>, %arg6: memref<256x128xbf16, #tpu.memory_space<vmem>>, %arg7: memref<1x128xf32, #tpu.memory_space<vmem>>, %arg8: memref<32x128xf32, #tpu.memory_space<vmem>>) attributes {dimension_semantics = [#tpu.dimension_semantics<arbitrary>], iteration_bounds = array<i64: 1>, scalar_prefetch = 0 : i64, scratch_operands = 0 : i64, tpu.core_type = #tpu.core_type<tc>, window_params = [{pipeline_mode = #tpu.pipeline_mode<synchronous>, transform_indices = @transform_0, window_bounds = array<i64: 32, 32>}, {pipeline_mode = #tpu.pipeline_mode<synchronous>, transform_indices = @transform_1, window_bounds = array<i64: 32, 128>}, {pipeline_mode = #tpu.pipeline_mode<synchronous>, transform_indices = @transform_2, window_bounds = array<i64: 1, 128>}, {pipeline_mode = #tpu.pipeline_mode<synchronous>, transform_indices = @transform_3, window_bounds = array<i64: 128, 256>}, {pipeline_mode = #tpu.pipeline_mode<synchronous>, transform_indices = @transform_4, window_bounds = array<i64: 1, 256>}, {pipeline_mode = #tpu.pipeline_mode<synchronous>, transform_indices = @transform_5, window_bounds = array<i64: 256, 128>}, {pipeline_mode = #tpu.pipeline_mode<synchronous>, transform_indices = @transform_6, window_bounds = array<i64: 1, 128>}, {pipeline_mode = #tpu.pipeline_mode<synchronous>, transform_indices = @transform_7, window_bounds = array<i64: 32, 128>}]} {
    %c0 = arith.constant 0 : index
    %c0_0 = arith.constant 0 : index
    %0 = vector.load %arg1[%c0, %c0_0] : memref<32x32xbf16, #tpu.memory_space<vmem>>, vector<32x32xbf16>
    %c0_1 = arith.constant 0 : index
    %c0_2 = arith.constant 0 : index
    %1 = vector.load %arg2[%c0_1, %c0_2] : memref<32x128xbf16, #tpu.memory_space<vmem>>, vector<32x128xbf16>
    %cst = arith.constant dense<0.000000e+00> : vector<32x128xf32>
    %2 = tpu.matmul %0, %1, %cst {dimension_numbers = #tpu.dot_dimension_numbers<[1], [0], [0], [1], [0, 0, 1, 1], [], []>} : vector<32x32xbf16>, vector<32x128xbf16>, vector<32x128xf32> -> vector<32x128xf32>
    %c0_3 = arith.constant 0 : index
    %c0_4 = arith.constant 0 : index
    %3 = vector.load %arg3[%c0_3, %c0_4] : memref<1x128xf32, #tpu.memory_space<vmem>>, vector<1x128xf32>
    %4 = vector.broadcast %3 : vector<1x128xf32> to vector<32x128xf32>
    %5 = arith.addf %2, %4 : vector<32x128xf32>
    %cst_5 = arith.constant 0.000000e+00 : f32
    %6 = vector.broadcast %cst_5 : f32 to vector<32x128xf32>
    %7 = arith.maximumf %5, %6 : vector<32x128xf32>
    %8 = arith.truncf %7 : vector<32x128xf32> to vector<32x128xbf16>
    %c0_6 = arith.constant 0 : index
    %c0_7 = arith.constant 0 : index
    %9 = vector.load %arg4[%c0_6, %c0_7] : memref<128x256xbf16, #tpu.memory_space<vmem>>, vector<128x256xbf16>
    %cst_8 = arith.constant dense<0.000000e+00> : vector<32x256xf32>
    %10 = tpu.matmul %8, %9, %cst_8 {dimension_numbers = #tpu.dot_dimension_numbers<[1], [0], [0], [1], [0, 0, 1, 1], [], []>} : vector<32x128xbf16>, vector<128x256xbf16>, vector<32x256xf32> -> vector<32x256xf32>
    %11 = arith.truncf %10 : vector<32x256xf32> to vector<32x256xbf16>
    %cst_9 = arith.constant dense<0.000000e+00> : vector<32x256xf32>
    %12 = tpu.matmul %0, %11, %cst_9 {dimension_numbers = #tpu.dot_dimension_numbers<[1], [0], [0], [1], [0, 0, 1, 1], [], []>} : vector<32x32xbf16>, vector<32x256xbf16>, vector<32x256xf32> -> vector<32x256xf32>
    %c0_10 = arith.constant 0 : index
    %c0_11 = arith.constant 0 : index
    %13 = vector.load %arg5[%c0_10, %c0_11] : memref<1x256xf32, #tpu.memory_space<vmem>>, vector<1x256xf32>
    %14 = vector.broadcast %13 : vector<1x256xf32> to vector<32x256xf32>
    %15 = arith.addf %12, %14 : vector<32x256xf32>
    %16 = arith.truncf %15 : vector<32x256xf32> to vector<32x256xbf16>
    %c0_12 = arith.constant 0 : index
    %c0_13 = arith.constant 0 : index
    %17 = vector.load %arg6[%c0_12, %c0_13] : memref<256x128xbf16, #tpu.memory_space<vmem>>, vector<256x128xbf16>
    %cst_14 = arith.constant dense<0.000000e+00> : vector<32x128xf32>
    %18 = tpu.matmul %16, %17, %cst_14 {dimension_numbers = #tpu.dot_dimension_numbers<[1], [0], [0], [1], [0, 0, 1, 1], [], []>} : vector<32x256xbf16>, vector<256x128xbf16>, vector<32x128xf32> -> vector<32x128xf32>
    %c0_15 = arith.constant 0 : index
    %c0_16 = arith.constant 0 : index
    %19 = vector.load %arg7[%c0_15, %c0_16] : memref<1x128xf32, #tpu.memory_space<vmem>>, vector<1x128xf32>
    %20 = vector.broadcast %19 : vector<1x128xf32> to vector<32x128xf32>
    %21 = arith.addf %18, %20 : vector<32x128xf32>
    %cst_17 = arith.constant dense<0xFF800000> : vector<32xf32>
    %22 = vector.multi_reduction <maximumf>, %21, %cst_17 [1] : vector<32x128xf32> to vector<32xf32>
    %23 = vector.shape_cast %22 : vector<32xf32> to vector<32x1xf32>
    %24 = vector.broadcast %23 : vector<32x1xf32> to vector<32x128xf32>
    %25 = arith.subf %21, %24 : vector<32x128xf32>
    %26 = math.exp %25 : vector<32x128xf32>
    %cst_18 = arith.constant dense<0.000000e+00> : vector<32xf32>
    %27 = vector.multi_reduction <add>, %26, %cst_18 [1] : vector<32x128xf32> to vector<32xf32>
    %28 = vector.shape_cast %27 : vector<32xf32> to vector<32x1xf32>
    %29 = math.log %28 : vector<32x1xf32>
    %30 = vector.broadcast %29 : vector<32x1xf32> to vector<32x128xf32>
    %31 = arith.subf %25, %30 : vector<32x128xf32>
    %c0_19 = arith.constant 0 : index
    %c0_20 = arith.constant 0 : index
    %32 = vector.load %arg8[%c0_19, %c0_20] : memref<32x128xf32, #tpu.memory_space<vmem>>, vector<32x128xf32>
    tpu.vector_store %arg8[%c0_19, %c0_20], %31 {strides = array<i32>} : memref<32x128xf32, #tpu.memory_space<vmem>>, vector<32x128xf32>,
    return
  }
  func.func @transform_0(%arg0: i32) -> (i32, i32) {
    %c0_i32 = arith.constant 0 : i32
    %c0_i32_0 = arith.constant 0 : i32
    %c0_i32_1 = arith.constant 0 : i32
    return %c0_i32, %c0_i32_0 : i32, i32
  }
  func.func @transform_1(%arg0: i32) -> (i32, i32) {
    %c0_i32 = arith.constant 0 : i32
    %c0_i32_0 = arith.constant 0 : i32
    %c0_i32_1 = arith.constant 0 : i32
    return %c0_i32, %c0_i32_0 : i32, i32
  }
  func.func @transform_2(%arg0: i32) -> (i32, i32) {
    %c0_i32 = arith.constant 0 : i32
    %c0_i32_0 = arith.constant 0 : i32
    %c0_i32_1 = arith.constant 0 : i32
    return %c0_i32, %c0_i32_0 : i32, i32
  }
  func.func @transform_3(%arg0: i32) -> (i32, i32) {
    %c0_i32 = arith.constant 0 : i32
    %c0_i32_0 = arith.constant 0 : i32
    %c0_i32_1 = arith.constant 0 : i32
    return %c0_i32, %c0_i32_0 : i32, i32
  }
  func.func @transform_4(%arg0: i32) -> (i32, i32) {
    %c0_i32 = arith.constant 0 : i32
    %c0_i32_0 = arith.constant 0 : i32
    %c0_i32_1 = arith.constant 0 : i32
    return %c0_i32, %c0_i32_0 : i32, i32
  }
  func.func @transform_5(%arg0: i32) -> (i32, i32) {
    %c0_i32 = arith.constant 0 : i32
    %c0_i32_0 = arith.constant 0 : i32
    %c0_i32_1 = arith.constant 0 : i32
    return %c0_i32, %c0_i32_0 : i32, i32
  }
  func.func @transform_6(%arg0: i32) -> (i32, i32) {
    %c0_i32 = arith.constant 0 : i32
    %c0_i32_0 = arith.constant 0 : i32
    %c0_i32_1 = arith.constant 0 : i32
    return %c0_i32, %c0_i32_0 : i32, i32
  }
  func.func @transform_7(%arg0: i32) -> (i32, i32) {
    %c0_i32 = arith.constant 0 : i32
    %c0_i32_0 = arith.constant 0 : i32
    %c0_i32_1 = arith.constant 0 : i32
    return %c0_i32, %c0_i32_0 : i32, i32
  }
}

</mosaic_0001>

<bundles_post_ra>
// kernel: tpu_custom_call.1
= control target key start
LH: loop header
LB: loop body
LE: loop exit
PB: predicated region body
PF: predicated region fallthrough
CT: control target
= control target key end

     0   :  { %12 = vsyncpa [#allocation3], 0  ;;  %s1012_s0 = inlined_call_operand.hbm [shape: bf16[32,32], index: 0, kind: input, shape index: {}]   ;;  %s1013_s1 = inlined_call_operand.hbm [shape: bf16[32,128], index: 1, kind: input, shape index: {}]   ;;  %s1014_s2 = inlined_call_operand.vmem [shape: f32[1,128], index: 2, kind: input, shape index: {}]   ;;  %s1015_s3 = inlined_call_operand.hbm [shape: bf16[128,256], index: 3, kind: input, shape index: {}]   ;;  %s1016_s4 = inlined_call_operand.vmem [shape: f32[1,256], index: 4, kind: input, shape index: {}]   ;;  %s1017_s5 = inlined_call_operand.hbm [shape: bf16[256,128], index: 5, kind: input, shape index: {}]   ;;  %s1018_s6 = inlined_call_operand.vmem [shape: f32[1,128], index: 6, kind: input, shape index: {}]   ;;  %s1019_s7 = inlined_call_operand.hbm [shape: f32[32,128], index: 7, kind: output, shape index: {}]  }
   0x1   :  { %13 = vsyncpa [#allocation6], 0 }
   0x2   :  { %14 = vsyncpa [#allocation9], 0 }
   0x3   :  { %15 = vsyncpa [#allocation4], 0  ;;  %s911_s24 = smov [#allocation5]   ;;  %s912_s26 = smov [#allocation2]  }
   0x4   :  { %s33_s25 = sshll.u32 %s911_s24, 4  ;;  %s21_s27 = sshll.u32 %s912_s26, 4  ;;  %s34_s25 = int_to_ptr.vmem [resolvable:$true] %s33_s25  ;;  %s22_s27 = int_to_ptr.vmem [resolvable:$true] %s21_s27 }
   0x5   :  { %s811_s28 = scalar_lea.vmem %s34_s25, 256  ;;  %p816_p1 = scmp.lt.s32.totalorder %s34_s25, %s34_s25 }
   0x6   :  { %p812_p0 = scmp.ne.s32.totalorder %s34_s25, %s811_s28  ;;  %p817_p2 = scmp.lt.s32.totalorder %s811_s28, %s811_s28 }
   0x8   :  { %p818_p3 = por %p817_p2, %p816_p1 }
   0xa   :  { %p819_p4 = pnand %p818_p3, %p812_p0 }
   0xc   :  { %822 = shalt.err (!%p819_p4)
}
   0xd   :  { %s913_s29 = smov 64   ;;  %s914_s30 = smov 4  }
   0xe   :  { %39 = dma.hbm_to_vmem [thread:$0]  %s1013_s1, 256, %s34_s25, [#allocation6], %s913_s29, %s913_s29, %s914_s30  }
   0xf   :  { %s831_s10 = scalar_lea.vmem %s22_s27, 256  ;;  %p836_p6 = scmp.lt.s32.totalorder %s22_s27, %s22_s27 }
  0x10   :  { %p832_p5 = scmp.ne.s32.totalorder %s22_s27, %s831_s10  ;;  %p837_p7 = scmp.lt.s32.totalorder %s831_s10, %s831_s10 }
  0x12   :  { %p838_p8 = por %p837_p7, %p836_p6 }
  0x14   :  { %p839_p9 = pnand %p838_p8, %p832_p5 }
  0x16   :  { %842 = shalt.err (!%p839_p9)
}
  0x17   :  { %27 = dma.hbm_to_vmem [thread:$0]  %s1012_s0, 256, %s22_s27, [#allocation3], %s913_s29, %s913_s29, %s914_s30  }
  0x18   :  { %s915_s13 = smov [#allocation7]  }
  0x19   :  { %s47_s14 = sshll.u32 %s915_s13, 4  ;;  %s48_s14 = int_to_ptr.vmem [resolvable:$true] %s47_s14 }
  0x1a   :  { %s851_s15 = scalar_lea.vmem %s48_s14, 2048  ;;  %p856_p11 = scmp.lt.s32.totalorder %s48_s14, %s48_s14 }
  0x1b   :  { %p852_p10 = scmp.ne.s32.totalorder %s48_s14, %s851_s15  ;;  %p857_p12 = scmp.lt.s32.totalorder %s851_s15, %s851_s15 }
  0x1d   :  { %p858_p13 = por %p857_p12, %p856_p11 }
  0x1f   :  { %p859_p0 = pnand %p858_p13, %p852_p10 }
  0x21   :  { %862 = shalt.err (!%p859_p0)
}
  0x22   :  { %s916_s1 = smov 128   ;;  %s917_s16 = smov 8  }
  0x23   :  { %53 = dma.hbm_to_vmem [thread:$0]  %s1015_s3, 2048, %s48_s14, [#allocation6], %s916_s1, %s916_s1, %s917_s16  }
  0x24   :  { %s918_s0 = smov [#allocation8]  }
  0x25   :  { %s61_s19 = sshll.u32 %s918_s0, 4  ;;  %s62_s19 = int_to_ptr.vmem [resolvable:$true] %s61_s19 }
  0x26   :  { %s871_s20 = scalar_lea.vmem %s62_s19, 2048  ;;  %p876_p2 = scmp.lt.s32.totalorder %s62_s19, %s62_s19 }
  0x27   :  { %p872_p1 = scmp.ne.s32.totalorder %s62_s19, %s871_s20  ;;  %p877_p3 = scmp.lt.s32.totalorder %s871_s20, %s871_s20 }
  0x29   :  { %p878_p4 = por %p877_p3, %p876_p2 }
  0x2b   :  { %p879_p5 = pnand %p878_p4, %p872_p1 }
  0x2d   :  { %882 = shalt.err (!%p879_p5)
}
  0x2e   :  { %67 = dma.hbm_to_vmem [thread:$0]  %s1017_s5, 2048, %s62_s19, [#allocation9], %s913_s29, %s913_s29, %s914_s30  }
  0x2f   :  { %903 = dma.done.wait [#allocation3], 256  }
  0x30   :  { %904 = vsyncadd [#allocation3], 4294967040 }
  0x31   :  { %905 = dma.done.wait [#allocation6], 2304  }
  0x32   :  { %906 = vsyncadd [#allocation6], 4294964992 }
  0x33   :  { %907 = dma.done.wait [#allocation9], 2048  }
  0x34   :  { %908 = vsyncadd [#allocation9], 4294965248  ;;  %v743_v0 = vld [vmem:[#allocation5 + $0x8] sm:$0xff]   ;;  %v744_v1 = vld [vmem:[#allocation5] sm:$0xff]   ;;  %vm120_vm0 = vcmask 261120   ;;  %v919_v20 = vmov 0  }
  0x35   :  { %725 = vmatprep.subr.bf16.mxu1 %v743_v0  ;;  %v985_v2 = vld [vmem:[#allocation2] sm:$0xff]   ;;  %v749_v3 = vld [vmem:[#allocation7 + $0x74] ss:$8 sps:$4 sm:$0xff]   ;;  %v989_v4 = vld [vmem:[#allocation2 + $0x8] sm:$0xff]   ;;  %379 = vmatprep.mubr.bf16.mxu0 %v919_v20 }
  0x36   :  { %726 = vmatpush3.bf16.msra.mxu1 %v743_v0  ;;  %729 = vmatprep.mubr.msk.bf16.mxu1 %vm120_vm0, %v985_v2  ;;  %v747_v5 = vld [vmem:[#allocation7 + $0x70] ss:$8 sps:$4 sm:$0xff]   ;;  %v752_v6 = vld [vmem:[#allocation7 + $0x64] ss:$8 sps:$4 sm:$0xff]   ;;  %v750_v7 = vld [vmem:[#allocation7 + $0x60] ss:$8 sps:$4 sm:$0xff]   ;;  %v337_v0 = vlaneseq }
  0x37   :  { %727 = vmatprep.subr.bf16.mxu1 %v744_v1  ;;  %v755_v8 = vld [vmem:[#allocation7 + $0x54] ss:$8 sps:$4 sm:$0xff]   ;;  %v753_v9 = vld [vmem:[#allocation7 + $0x50] ss:$8 sps:$4 sm:$0xff]   ;;  %v758_v10 = vld [vmem:[#allocation7 + $0x44] ss:$8 sps:$4 sm:$0xff]  }
  0x38   :  { %v756_v11 = vld [vmem:[#allocation7 + $0x40] ss:$8 sps:$4 sm:$0xff]   ;;  %v761_v12 = vld [vmem:[#allocation7 + $0x34] ss:$8 sps:$4 sm:$0xff]   ;;  %v759_v13 = vld [vmem:[#allocation7 + $0x30] ss:$8 sps:$4 sm:$0xff]  }
  0x39   :  { %v764_v14 = vld [vmem:[#allocation7 + $0x24] ss:$8 sps:$4 sm:$0xff]   ;;  %v762_v15 = vld [vmem:[#allocation7 + $0x20] ss:$8 sps:$4 sm:$0xff]   ;;  %v767_v16 = vld [vmem:[#allocation7 + $0x14] ss:$8 sps:$4 sm:$0xff]  }
  0x3a   :  { %728 = vmatpush3.bf16.msra.mxu1 %v744_v1  ;;  %v765_v17 = vld [vmem:[#allocation7 + $0x10] ss:$8 sps:$4 sm:$0xff]   ;;  %v770_v18 = vld [vmem:[#allocation7 + $0x4] ss:$8 sps:$4 sm:$0xff]   ;;  %v768_v19 = vld [vmem:[#allocation7] ss:$8 sps:$4 sm:$0xff]  }
  0x3b   :  { %278 = vmatprep.subr.bf16.mxu1 %v749_v3  ;;  %v651_v23 = vld [vmem:[%s1014_s2] ss:$0 sm:$0xff]  ;;  %v771_v47 = vld [vmem:[#allocation8 + $0x78] sm:$0xff]   ;;  %v773_v50 = vld [vmem:[#allocation8 + $0x70] sm:$0xff]   ;;  %v338_v1 = vshrl.u32 %v337_v0, 7 }
  0x3c   :  { %v772_v49 = vld [vmem:[#allocation8 + $0x38] sm:$0xff]   ;;  %v774_v51 = vld [vmem:[#allocation8 + $0x30] sm:$0xff]   ;;  %v775_v52 = vld [vmem:[#allocation8 + $0x68] sm:$0xff]  }
  0x3d   :  { %730 = vmatmul.mubr.msk.bf16.vlgmr.msra.gmra.mxu1 %vm120_vm0, %v989_v4  ;;  %v776_v53 = vld [vmem:[#allocation8 + $0x28] sm:$0xff]   ;;  %v777_v54 = vld [vmem:[#allocation8 + $0x60] sm:$0xff]   ;;  %v779_v56 = vld [vmem:[#allocation8 + $0x58] sm:$0xff]   ;;  %v339_v3 = vsub.s32 0, %v338_v1 }
  0x3e   :  { %279 = vmatpush1.bf16.msra.mxu1 %v747_v5  ;;  %310 = vmatprep.mubr.bf16.mxu1 %v919_v20  ;;  %v778_v55 = vld [vmem:[#allocation8 + $0x20] sm:$0xff]   ;;  %v780_v57 = vld [vmem:[#allocation8 + $0x18] sm:$0xff]   ;;  %v781_v58 = vld [vmem:[#allocation8 + $0x50] sm:$0xff]  }
  0x3f   :  { %280 = vmatprep.subr.bf16.mxu1 %v752_v6  ;;  %v782_v59 = vld [vmem:[#allocation8 + $0x10] sm:$0xff]   ;;  %v783_v60 = vld [vmem:[#allocation8 + $0x48] sm:$0xff]   ;;  %v785_v62 = vld [vmem:[#allocation8 + $0x40] sm:$0xff]  }
  0x40   :  { %v784_v61 = vld [vmem:[#allocation8 + $0x8] sm:$0xff]   ;;  %v786_v63 = vld [vmem:[#allocation8] sm:$0xff]  }
  0x41   :  { %v335_v5 = vld [vmem:[%s1016_s4] sm:$0x3] }
  0x42   :  { %281 = vmatpush1.bf16.msra.mxu1 %v750_v7 }
  0x43   :  { %282 = vmatprep.subr.bf16.mxu1 %v755_v8  ;;  %v340_v8 = vrot.slane %v335_v5, %v339_v3 }
  0x46   :  { %283 = vmatpush1.bf16.msra.mxu1 %v753_v9 }
  0x47   :  { %284 = vmatprep.subr.bf16.mxu1 %v758_v10 }
  0x4a   :  { %285 = vmatpush1.bf16.msra.mxu1 %v756_v11 }
  0x4b   :  { %286 = vmatprep.subr.bf16.mxu1 %v761_v12 }
  0x4e   :  { %287 = vmatpush1.bf16.msra.mxu1 %v759_v13 }
  0x4f   :  { %288 = vmatprep.subr.bf16.mxu1 %v764_v14 }
  0x52   :  { %289 = vmatpush1.bf16.msra.mxu1 %v762_v15 }
  0x53   :  { %290 = vmatprep.subr.bf16.mxu1 %v767_v16 }
  0x56   :  { %291 = vmatpush1.bf16.msra.mxu1 %v765_v17 }
  0x57   :  { %292 = vmatprep.subr.bf16.mxu1 %v770_v18 }
  0x5a   :  { %293 = vmatpush1.bf16.msra.mxu1 %v768_v19 }
  0xfd   :  { %v731_v21 = vpop.f32.mrf.mxu1 }
  0xfe   :  { %v170_v32 = vadd.f32 %v731_v21, %v651_v23 }
  0xff   :  { %v161_v22 = vpop.f32.mrf.mxu1 }
 0x100   :  { %v162_v25 = vadd.f32 %v651_v23, %v161_v22  ;;  %v178_v34 = vmax.f32 %v170_v32, 0.0 }
 0x101   :  { %v732_v24 = vpop.f32.mrf.mxu1 }
 0x102   :  { %v176_v28 = vmax.f32 %v162_v25, 0.0  ;;  %v173_v30 = vadd.f32 %v732_v24, %v651_v23 }
 0x103   :  { %v164_v26 = vpop.f32.mrf.mxu1 }
 0x104   :  { %v165_v27 = vadd.f32 %v651_v23, %v164_v26  ;;  %v179_v33 = vmax.f32 %v173_v30, 0.0 }
 0x106   :  { %v177_v29 = vmax.f32 %v165_v27, 0.0  ;;  %v181_v35 = vpack.c.bf16 %v179_v33, %v178_v34 }
 0x108   :  { %v180_v31 = vpack.c.bf16 %v177_v29, %v176_v28  ;;  %v676_v29 = vld [vmem:[%s1018_s6] ss:$0 sm:$0xff]  ;;  %s920_s6 = smov [#allocation10]  }
 0x109   :  { %s637_s25 = sshll.u32 %s920_s6, 4  ;;  %s638_s25 = int_to_ptr.vmem [resolvable:$true] %s637_s25 }
 0x10a   :  { %311 = vmatmul.mubr.bf16.vlgmr.msra.gmra.mxu1 %v180_v31  ;;  %s883_s26 = scalar_lea.vmem %s638_s25, 512  ;;  %p888_p7 = scmp.lt.s32.totalorder %s638_s25, %s638_s25 }
 0x10b   :  { %320 = vmatprep.mubr.bf16.mxu1 %v919_v20  ;;  %p884_p6 = scmp.ne.s32.totalorder %s638_s25, %s883_s26  ;;  %p889_p8 = scmp.lt.s32.totalorder %s883_s26, %s883_s26 }
 0x10d   :  { %p890_p9 = por %p889_p8, %p888_p7 }
 0x10f   :  { %p891_p10 = pnand %p890_p9, %p884_p6 }
 0x112   :  { %321 = vmatmul.mubr.bf16.gmra.mxu1 %v181_v35 }
 0x1ca   :  { %v312_v36 = vpop.f32.mrf.mxu1 }
 0x1cc   :  { %v314_v37 = vpop.f32.mrf.mxu1 }
 0x1ce   :  { %v316_v38 = vpop.f32.mrf.mxu1 }
 0x1cf   :  { %v331_v48 = vpack.c.bf16 %v316_v38, %v312_v36 }
 0x1d0   :  { %v318_v39 = vpop.f32.mrf.mxu1 }
 0x1d1   :  { %v332_v46 = vpack.c.bf16 %v318_v39, %v314_v37 }
 0x1d2   :  { %v322_v40 = vpop.f32.mrf.mxu1 }
 0x1d4   :  { %v324_v41 = vpop.f32.mrf.mxu1 }
 0x1d6   :  { %v326_v42 = vpop.f32.mrf.mxu1 }
 0x1d7   :  { %v333_v45 = vpack.c.bf16 %v326_v42, %v322_v40 }
 0x1d8   :  { %v328_v43 = vpop.f32.mrf.mxu1 }
 0x1d9   :  { %v334_v44 = vpack.c.bf16 %v328_v43, %v324_v41 }
 0x1db   :  { %359 = vmatprep.subr.bf16.mxu0 %v334_v44 }
 0x1dc   :  { %360 = vmatpush1.bf16.msra.mxu0 %v333_v45 }
 0x1dd   :  { %361 = vmatprep.subr.bf16.mxu0 %v332_v46 }
 0x1e0   :  { %362 = vmatpush1.bf16.msra.mxu0 %v331_v48 }
 0x1e1   :  { %697 = vmatprep.subr.bf16.mxu0 %v771_v47 }
 0x1e3   :  { %674 = vmatmul.mubr.msk.bf16.vlgmr.msra.gmra.mxu0 %vm120_vm0, %v985_v2  ;;  %v343_v2 = vsub.s32 1, %v338_v1 }
 0x1e4   :  { %389 = vmatprep.mubr.bf16.mxu0 %v919_v20  ;;  %698 = vmatpush3.bf16.msra.mxu0 %v772_v49 }
 0x1e5   :  { %699 = vmatprep.subr.bf16.mxu0 %v773_v50  ;;  %v344_v7 = vrot.slane %v335_v5, %v343_v2 }
 0x1e8   :  { %700 = vmatpush3.bf16.msra.mxu0 %v774_v51 }
 0x1e9   :  { %701 = vmatprep.subr.bf16.mxu0 %v775_v52 }
 0x1eb   :  { %675 = vmatmul.mubr.msk.bf16.gmra.mxu0 %vm120_vm0, %v989_v4 }
 0x1ec   :  { %702 = vmatpush3.bf16.msra.mxu0 %v776_v53 }
 0x1ed   :  { %703 = vmatprep.subr.bf16.mxu0 %v777_v54 }
 0x1f0   :  { %704 = vmatpush3.bf16.msra.mxu0 %v778_v55 }
 0x1f1   :  { %705 = vmatprep.subr.bf16.mxu0 %v779_v56 }
 0x1f4   :  { %706 = vmatpush3.bf16.msra.mxu0 %v780_v57 }
 0x1f5   :  { %707 = vmatprep.subr.bf16.mxu0 %v781_v58 }
 0x1f8   :  { %708 = vmatpush3.bf16.msra.mxu0 %v782_v59 }
 0x1f9   :  { %709 = vmatprep.subr.bf16.mxu0 %v783_v60 }
 0x1fc   :  { %710 = vmatpush3.bf16.msra.mxu0 %v784_v61 }
 0x1fd   :  { %711 = vmatprep.subr.bf16.mxu0 %v785_v62 }
 0x200   :  { %712 = vmatpush3.bf16.msra.mxu0 %v786_v63 }
 0x2a3   :  { %v381_v4 = vpop.f32.mrf.mxu0 }
 0x2a4   :  { %v382_v14 = vadd.f32 %v381_v4, %v340_v8 }
 0x2a5   :  { %v383_v6 = vpop.f32.mrf.mxu0 }
 0x2a6   :  { %v384_v12 = vadd.f32 %v383_v6, %v344_v7 }
 0x2a7   :  { %v385_v9 = vpop.f32.mrf.mxu0 }
 0x2a8   :  { %v386_v10 = vadd.f32 %v385_v9, %v340_v8 }
 0x2a9   :  { %v387_v11 = vpop.f32.mrf.mxu0 }
 0x2aa   :  { %v388_v13 = vadd.f32 %v387_v11, %v344_v7  ;;  %v400_v17 = vpack.c.bf16 %v386_v10, %v382_v14 }
 0x2ab   :  { %v391_v15 = vpop.f32.mrf.mxu0 }
 0x2ac   :  { %v401_v16 = vpack.c.bf16 %v388_v13, %v384_v12  ;;  %v392_v24 = vadd.f32 %v391_v15, %v340_v8 }
 0x2ad   :  { %v393_v18 = vpop.f32.mrf.mxu0 }
 0x2ae   :  { %571 = vmatprep.mubr.bf16.mxu0 %v401_v16  ;;  %v394_v22 = vadd.f32 %v393_v18, %v344_v7 }
 0x2af   :  { %v395_v19 = vpop.f32.mrf.mxu0  ;;  %572 = vmatmul.mubr.bf16.vlgmr.msra.gmra.mxu0 %v400_v17 }
 0x2b0   :  { %v396_v20 = vadd.f32 %v395_v19, %v340_v8 }
 0x2b1   :  { %v397_v21 = vpop.f32.mrf.mxu0 }
 0x2b2   :  { %v398_v23 = vadd.f32 %v397_v21, %v344_v7  ;;  %v402_v26 = vpack.c.bf16 %v396_v20, %v392_v24 }
 0x2b4   :  { %v403_v25 = vpack.c.bf16 %v398_v23, %v394_v22 }
 0x2b6   :  { %579 = vmatprep.mubr.bf16.mxu0 %v403_v25 }
 0x2b7   :  { %580 = vmatmul.mubr.bf16.gmra.mxu0 %v402_v26 }
 0x36f   :  { %v713_v27 = vpop.f32.mrf.mxu0 }
 0x371   :  { %v714_v28 = vpop.f32.mrf.mxu0 }
 0x372   :  { %v715_v30 = vadd.f32 %v714_v28, %v713_v27 }
 0x373   :  { %v716_v31 = vpop.f32.mrf.mxu0 }
 0x374   :  { %v574_v32 = vadd.f32 %v715_v30, %v676_v29 }
 0x375   :  { %v717_v33 = vpop.f32.mrf.mxu0 }
 0x376   :  { %v718_v34 = vadd.f32 %v717_v33, %v716_v31  ;;  %588 = vmax.xlane.f32.xlu0 %v574_v32 }
 0x377   :  { %v719_v35 = vpop.f32.mrf.mxu0 }
 0x378   :  { %v577_v36 = vadd.f32 %v718_v34, %v676_v29 }
 0x379   :  { %v720_v37 = vpop.f32.mrf.mxu0 }
 0x37a   :  { %v721_v38 = vadd.f32 %v720_v37, %v719_v35  ;;  %590 = vmax.xlane.f32.xlu0 %v577_v36 }
 0x37b   :  { %v722_v39 = vpop.f32.mrf.mxu0 }
 0x37c   :  { %v582_v40 = vadd.f32 %v721_v38, %v676_v29 }
 0x37d   :  { %v723_v41 = vpop.f32.mrf.mxu0 }
 0x37e   :  { %v724_v42 = vadd.f32 %v723_v41, %v722_v39  ;;  %592 = vmax.xlane.f32.xlu1 %v582_v40 }
 0x380   :  { %v585_v43 = vadd.f32 %v724_v42, %v676_v29 }
 0x382   :  { %594 = vmax.xlane.f32.xlu1 %v585_v43 }
 0x3ff   :  { %v589_v44 = vpop.xlane.xlu0 %588 }
 0x400   :  { %v596_v45 = vsub.f32 %v574_v32, %v589_v44 }
 0x402   :  { %v600_v46 = vmul.f32 1.442695, %v596_v45 }
 0x403   :  { %v591_v47 = vpop.xlane.xlu0 %590 }
 0x404   :  { %787 = vpow2.f32 %v600_v46  ;;  %v597_v48 = vsub.f32 %v577_v36, %v591_v47 }
 0x406   :  { %v602_v49 = vmul.f32 1.442695, %v597_v48 }
 0x407   :  { %v593_v50 = vpop.xlane.xlu1 %592 }
 0x408   :  { %789 = vpow2.f32 %v602_v49  ;;  %v598_v51 = vsub.f32 %v582_v40, %v593_v50 }
 0x40a   :  { %v604_v52 = vmul.f32 1.442695, %v598_v51 }
 0x40b   :  { %v595_v53 = vpop.xlane.xlu1 %594 }
 0x40c   :  { %791 = vpow2.f32 %v604_v52  ;;  %v599_v54 = vsub.f32 %v585_v43, %v595_v53 }
 0x40e   :  { %v606_v55 = vmul.f32 1.442695, %v599_v54 }
 0x410   :  { %793 = vpow2.f32 %v606_v55 }
 0x411   :  { %v788_v56 = vpop.eup %787 }
 0x412   :  { %608 = vadd.xlane.f32.xlu0 %v788_v56 }
 0x415   :  { %v790_v57 = vpop.eup %789 }
 0x416   :  { %610 = vadd.xlane.f32.xlu1 %v790_v57 }
 0x419   :  { %v792_v58 = vpop.eup %791 }
 0x41a   :  { %612 = vadd.xlane.f32.xlu0 %v792_v58 }
 0x41d   :  { %v794_v59 = vpop.eup %793 }
 0x41e   :  { %614 = vadd.xlane.f32.xlu1 %v794_v59 }
 0x49b   :  { %v609_v60 = vpop.xlane.xlu0 %608 }
 0x49c   :  { %795 = vlog2.f32 %v609_v60 }
 0x49f   :  { %v611_v61 = vpop.xlane.xlu1 %610 }
 0x4a0   :  { %797 = vlog2.f32 %v611_v61 }
 0x4a3   :  { %v613_v62 = vpop.xlane.xlu0 %612 }
 0x4a4   :  { %799 = vlog2.f32 %v613_v62 }
 0x4a7   :  { %v615_v63 = vpop.xlane.xlu1 %614 }
 0x4a8   :  { %801 = vlog2.f32 %v615_v63 }
 0x4a9   :  { %v796_v0 = vpop.eup %795 }
 0x4aa   :  { %v617_v1 = vmul.f32 0.6931472, %v796_v0 }
 0x4ac   :  { %v624_v2 = vsub.f32 %v596_v45, %v617_v1 }
 0x4ad   :  { %v798_v3 = vpop.eup %797 }
 0x4ae   :  { %628 = vst [vmem:[#allocation10] sm:$0xff] %v624_v2  ;;  %v619_v4 = vmul.f32 0.6931472, %v798_v3 }
 0x4b0   :  { %v625_v5 = vsub.f32 %v597_v48, %v619_v4 }
 0x4b1   :  { %v800_v6 = vpop.eup %799 }
 0x4b2   :  { %629 = vst [vmem:[#allocation10 + $0x8] sm:$0xff] %v625_v5  ;;  %v621_v7 = vmul.f32 0.6931472, %v800_v6 }
 0x4b4   :  { %v626_v8 = vsub.f32 %v598_v51, %v621_v7 }
 0x4b5   :  { %v802_v9 = vpop.eup %801 }
 0x4b6   :  { %630 = vst [vmem:[#allocation10 + $0x10] sm:$0xff] %v626_v8  ;;  %v623_v10 = vmul.f32 0.6931472, %v802_v9 }
 0x4b8   :  { %v627_v11 = vsub.f32 %v599_v54, %v623_v10 }
 0x4ba   :  { %631 = vst [vmem:[#allocation10 + $0x18] sm:$0xff] %v627_v11 }
 0x4bb   :  { %894 = shalt.err (!%p891_p10)
}
 0x4bc   :  { %643 = dma.vmem_to_hbm [thread:$0]  %s638_s25, 512, %s1019_s7, [#allocation4], %s916_s1, %s916_s1, %s917_s16  }
 0x4bd   :  { %909 = dma.done.wait [#allocation4], 512  }
 0x4be   :  { %910 = vsyncadd [#allocation4], 4294966784 }
 0x4bf   :  { %647 = vsyncpa [#allocation3], 1 }
 0x4c0   :  { %648 = vsyncpa [#allocation6], 1 }
 0x4c1   :  { %649 = vsyncpa [#allocation9], 1 }
 0x4c2   :  { %650 = vsyncpa [#allocation4], 1 }

</bundles_post_ra>
